<compile_context>
chip_gen: v7x
topology: tpu7x:2x2x1
jax: 0.10.0
libtpu: 0.0.40
codegen_flags: <defaults>
</compile_context>

<pallas_src>
import functools

import numpy as np
import jax
import jax.numpy as jnp
from jax.experimental import pallas as pl
from jax.experimental.pallas import tpu as pltpu

# ----------------------------- configuration --------------------------------
N_QUBITS = 4                  # qubit_dict['qcl'] (synthetic choice: 4 qubits -> 16 amplitudes)
DEPTH = 5
NUM_CLASSES = 2
DIM = 2 ** N_QUBITS           # state-vector dimension (16)
PACK = 128 // DIM             # samples packed per 128-lane row (8)
LANES = PACK * DIM            # 128


# ------------------- circuit -> unitary (host-side glue) --------------------
def _rot_matrix(phi, theta, omega):
    # PennyLane qml.Rot(phi, theta, omega) = RZ(omega) RY(theta) RZ(phi)
    c = np.cos(theta / 2.0)
    s = np.sin(theta / 2.0)
    return np.array(
        [[np.exp(-0.5j * (phi + omega)) * c, -np.exp(0.5j * (phi - omega)) * s],
         [np.exp(-0.5j * (phi - omega)) * s,  np.exp(0.5j * (phi + omega)) * c]],
        dtype=np.complex128)


def _embed_1q(m2, wire, n):
    u = np.eye(1, dtype=np.complex128)
    eye2 = np.eye(2, dtype=np.complex128)
    for w in range(n):                      # PennyLane: wire 0 is the most significant bit
        u = np.kron(u, m2 if w == wire else eye2)
    return u


def _cnot_matrix(control, target, n):
    dim = 2 ** n
    m = np.zeros((dim, dim), dtype=np.complex128)
    for k in range(dim):
        cbit = (k >> (n - 1 - control)) & 1
        j = k ^ (1 << (n - 1 - target)) if cbit else k
        m[j, k] = 1.0
    return m


def build_circuit_unitary(weights_np):
    """weights_np: (DEPTH, N_QUBITS, 3) -> full (DIM, DIM) complex unitary."""
    u = np.eye(DIM, dtype=np.complex128)
    for d in range(DEPTH):
        for i in range(N_QUBITS):                               # entangling CNOT ring
            u = _cnot_matrix(i, (i + 1) % N_QUBITS, N_QUBITS) @ u
        for i in range(N_QUBITS):                               # parametrized rotations
            phi, theta, omega = (float(v) for v in weights_np[d, i])
            u = _embed_1q(_rot_matrix(phi, theta, omega), i, N_QUBITS) @ u
    return u


def build_zsign():
    """(DIM, N_QUBITS) sign table: entry [k, q] = <k| Z_q |k> = +/-1."""
    z = np.zeros((DIM, N_QUBITS), dtype=np.float64)
    for k in range(DIM):
        for q in range(N_QUBITS):
            bit = (k >> (N_QUBITS - 1 - q)) & 1
            z[k, q] = 1.0 - 2.0 * bit
    return z


def build_qcl_constants(weights):
    """Host-side, once per weight update.  Block-diagonal lane-dense constants for the
    8-samples-per-row packed layout."""
    U = build_circuit_unitary(np.asarray(weights))
    eye_p = np.eye(PACK, dtype=np.float64)
    # (128, 256): real halves in lanes 0..127, imag halves in 128..255 (128-aligned split)
    ut_bd = np.concatenate(
        [np.kron(eye_p, U.T.real), np.kron(eye_p, U.T.imag)], axis=1).astype(np.float32)
    # (128, 16): cols 0..7 -> class-0 logit per packed sample, cols 8..15 -> class-1
    zs = build_zsign()[:, :NUM_CLASSES]
    zsign_bd = np.concatenate(
        [np.kron(eye_p, zs[:, 0:1]), np.kron(eye_p, zs[:, 1:2])], axis=1).astype(np.float32)
    # (128, 128): per-sample segment-sum mask (L2 normalization of each 16-lane segment)
    seg_mask = np.kron(eye_p, np.ones((DIM, DIM))).astype(np.float32)
    return jnp.asarray(seg_mask), jnp.asarray(ut_bd), jnp.asarray(zsign_bd)


def _round_up(a, m):
    return (a + m - 1) // m * m


# ------------------------------- Pallas kernel -------------------------------
# Layout: PyTorch NCHW input is flattened row-major to (B, 16) in the wrapper, then
# packed 8 samples per 128-lane row -> (rows, 128).  Rows sit on sublanes.
def qcl_loss_kernel(x_ref, y_ref, seg_ref, ut_ref, zsign_ref, loss_ref, *, true_b):
    x = x_ref[...]                                   # (TBR, 128): 8 samples x 16 amplitudes/row

    # AmplitudeEmbedding(normalize=True, pad_with=0): per-sample L2 normalization.
    # Per-16-lane-segment sum of squares via a block-diagonal ones matmul (MXU has slack);
    # the eps clamp guards the all-zero padding rows.
    sumsq = jnp.dot(x * x, seg_ref[...], preferred_element_type=jnp.float32)      # (TBR, 128)
    psi0 = x * jax.lax.rsqrt(jnp.maximum(sumsq, 1e-12))

    # |psi> = U|psi0> for all 8 packed samples: one MXU pass vs block-diag [U^T.re | U^T.im]
    s = jnp.dot(psi0, ut_ref[...], preferred_element_type=jnp.float32)            # (TBR, 256)
    sre = s[:, :LANES]                               # 128-aligned split -> zero-cost views
    sim = s[:, LANES:]
    probs = sre * sre + sim * sim                                                  # (TBR, 128)

    # logits <Z_0>, <Z_1> per packed sample
    preds = jnp.dot(probs, zsign_ref[...], preferred_element_type=jnp.float32)     # (TBR, 16)
    l0 = preds[:, :PACK]                                                           # (TBR, 8)
    l1 = preds[:, PACK:2 * PACK]                                                   # (TBR, 8)

    # CrossEntropyLoss per sample (C = 2): logsumexp(logits) - logit[target]
    m = jnp.maximum(l0, l1)
    lse = m + jnp.log(jnp.exp(l0 - m) + jnp.exp(l1 - m))
    y = y_ref[...]                                   # (TBR, 8) f32 labels in {0, 1}
    per_sample = lse - (l0 * (1.0 - y) + l1 * y)

    # mask batch-padding samples (true_b is static), reduce to one partial sum per grid step
    row = jax.lax.broadcasted_iota(jnp.int32, per_sample.shape, 0)
    col = jax.lax.broadcasted_iota(jnp.int32, per_sample.shape, 1)
    sample_idx = (pl.program_id(0) * per_sample.shape[0] + row) * PACK + col
    per_sample = jnp.where(sample_idx < true_b, per_sample, 0.0)

    loss_ref[...] = jnp.sum(per_sample, keepdims=True)          # (1, 1) per-tile partial sum


def qcl_classifier_loss(x, y, seg_mask, ut_bd, zsign_bd, *, tile_b=4096):
    """Forward pass of QCL_classifier: scalar cross-entropy loss (mean over true batch)."""
    B = x.shape[0]
    xf = x.reshape(B, -1).astype(jnp.float32)                   # torch.flatten(x, start_dim=1)
    F = xf.shape[1]
    assert F <= DIM, "flattened features must fit in 2^n_qubits amplitudes"
    if F < DIM:
        xf = jnp.pad(xf, ((0, 0), (0, DIM - F)))                # pad_with=0

    # ---- 8-samples-per-row packing + batch tiling -------------------------------------
    rows = -(-B // PACK)                                        # ceil(B / 8)
    rows8 = _round_up(rows, 8)                                  # sublane multiple
    max_tbr = max(8, (tile_b // PACK) // 8 * 8)                 # batch-tile in rows
    if rows8 <= 8:
        tbr = rows8
    elif rows8 <= max_tbr:
        tbr = _round_up(-(-rows8 // 2), 8)                      # >=2 grid steps (v7x: 2 TCs)
    else:
        tbr = max_tbr
    rows_pad = _round_up(rows8, tbr)
    b_pad = rows_pad * PACK

    if b_pad > B:
        xf = jnp.pad(xf, ((0, b_pad - B), (0, 0)))
        y_p = jnp.pad(y, (0, b_pad - B))
    else:
        y_p = y
    x_pk = xf.reshape(rows_pad, LANES)                          # lane-dense packed input
    y_pk = y_p.astype(jnp.float32).reshape(rows_pad, PACK)      # packed labels (tiny stream)

    grid = (rows_pad // tbr,)
    partial = pl.pallas_call(
        functools.partial(qcl_loss_kernel, true_b=B),
        out_shape=jax.ShapeDtypeStruct((grid[0], 1), jnp.float32),
        grid=grid,
        in_specs=[
            pl.BlockSpec((tbr, LANES), lambda i: (i, 0)),          # packed input tile
            pl.BlockSpec((tbr, PACK), lambda i: (i, 0)),           # packed labels
            pl.BlockSpec((LANES, LANES), lambda i: (0, 0)),        # segment-sum mask (const)
            pl.BlockSpec((LANES, 2 * LANES), lambda i: (0, 0)),    # block-diag [U^T.re|U^T.im]
            pl.BlockSpec((LANES, 2 * PACK), lambda i: (0, 0)),     # block-diag Z-sign table
        ],
        out_specs=pl.BlockSpec((1, 1), lambda i: (i, 0)),          # one partial sum per tile
        compiler_params=pltpu.CompilerParams(dimension_semantics=("parallel",)),
    )(x_pk, y_pk, seg_mask, ut_bd, zsign_bd)

    return jnp.sum(partial) / B                                    # mean over the TRUE batch


# jitted step: the (expensive) unitary construction stays outside, passed as device arrays
qcl_classifier_loss_jit = jax.jit(qcl_classifier_loss, static_argnames=("tile_b",))


# --------------------------- pure-JAX reference ------------------------------
def qcl_classifier_loss_ref(x, y, weights):
    B = x.shape[0]
    xf = x.reshape(B, -1).astype(jnp.float32)
    if xf.shape[1] < DIM:
        xf = jnp.pad(xf, ((0, 0), (0, DIM - xf.shape[1])))
    psi0 = xf / jnp.linalg.norm(xf, axis=-1, keepdims=True)
    U = jnp.asarray(build_circuit_unitary(np.asarray(weights)), dtype=jnp.complex64)
    psi = psi0.astype(jnp.complex64) @ U.T
    probs = jnp.abs(psi) ** 2
    expz = probs @ jnp.asarray(build_zsign(), dtype=jnp.float32)
    preds = expz[:, :NUM_CLASSES]
    logp = jax.nn.log_softmax(preds, axis=-1)
    return -jnp.mean(jnp.take_along_axis(logp, y[:, None], axis=-1))


# ----------------------------------- main ------------------------------------
if __name__ == "__main__":
    key = jax.random.PRNGKey(0)
    kx, ky, kw = jax.random.split(key, 3)

    # NCHW input; 1*4*4 = 16 features == 2^N_QUBITS amplitudes
    x = jax.random.normal(kx, (2, 1, 4, 4), dtype=jnp.float32)
    y = jax.random.randint(ky, (2,), 0, NUM_CLASSES)
    # deterministic parameter init (TorchLayer default: uniform in [0, 2*pi))
    weights = jax.random.uniform(kw, (DEPTH, N_QUBITS, 3),
                                 dtype=jnp.float32, minval=0.0, maxval=2.0 * np.pi)

    # host-side circuit folding, done once per weight update (cached across forward calls)
    seg_mask, ut_bd, zsign_bd = build_qcl_constants(weights)

    loss = qcl_classifier_loss_jit(x, y, seg_mask, ut_bd, zsign_bd)
    jax.block_until_ready(loss)

    ref = qcl_classifier_loss_ref(x, y, weights)
    np.testing.assert_allclose(float(loss), float(ref), rtol=1e-4, atol=1e-5)

    print("KERNEL_OK")
</pallas_src>

<mosaic_0001>
module attributes {stable_mosaic.version = 11 : i64} {
  func.func @qcl_loss_kernel(%arg0: i32, %arg1: memref<8x128xf32, #tpu.memory_space<vmem>>, %arg2: memref<8x8xf32, #tpu.memory_space<vmem>>, %arg3: memref<128x128xf32, #tpu.memory_space<vmem>>, %arg4: memref<128x256xf32, #tpu.memory_space<vmem>>, %arg5: memref<128x16xf32, #tpu.memory_space<vmem>>, %arg6: memref<1x1xf32, #tpu.memory_space<vmem>>) attributes {dimension_semantics = [#tpu.dimension_semantics<parallel>], iteration_bounds = array<i64: 1>, scalar_prefetch = 0 : i64, scratch_operands = 0 : i64, tpu.core_type = #tpu.core_type<tc>, window_params = [{transform_indices = @transform_0, window_bounds = array<i64: 8, 128>}, {transform_indices = @transform_1, window_bounds = array<i64: 8, 8>}, {pipeline_mode = #tpu.pipeline_mode<synchronous>, transform_indices = @transform_2, window_bounds = array<i64: 128, 128>}, {pipeline_mode = #tpu.pipeline_mode<synchronous>, transform_indices = @transform_3, window_bounds = array<i64: 128, 256>}, {pipeline_mode = #tpu.pipeline_mode<synchronous>, transform_indices = @transform_4, window_bounds = array<i64: 128, 16>}, {transform_indices = @transform_5, window_bounds = array<i64: 1, 1>}]} {
    %c0 = arith.constant 0 : index
    %c0_0 = arith.constant 0 : index
    %0 = vector.load %arg1[%c0, %c0_0] : memref<8x128xf32, #tpu.memory_space<vmem>>, vector<8x128xf32>
    %1 = arith.mulf %0, %0 : vector<8x128xf32>
    %c0_1 = arith.constant 0 : index
    %c0_2 = arith.constant 0 : index
    %2 = vector.load %arg3[%c0_1, %c0_2] : memref<128x128xf32, #tpu.memory_space<vmem>>, vector<128x128xf32>
    %cst = arith.constant dense<0.000000e+00> : vector<8x128xf32>
    %3 = tpu.matmul %1, %2, %cst {dimension_numbers = #tpu.dot_dimension_numbers<[1], [0], [0], [1], [0, 0, 1, 1], [], []>} : vector<8x128xf32>, vector<128x128xf32>, vector<8x128xf32> -> vector<8x128xf32>
    %cst_3 = arith.constant 9.99999996E-13 : f32
    %4 = vector.broadcast %cst_3 : f32 to vector<8x128xf32>
    %5 = arith.maximumf %3, %4 : vector<8x128xf32>
    %6 = math.rsqrt %5 : vector<8x128xf32>
    %7 = arith.mulf %0, %6 : vector<8x128xf32>
    %c0_4 = arith.constant 0 : index
    %c0_5 = arith.constant 0 : index
    %8 = vector.load %arg4[%c0_4, %c0_5] : memref<128x256xf32, #tpu.memory_space<vmem>>, vector<128x256xf32>
    %cst_6 = arith.constant dense<0.000000e+00> : vector<8x256xf32>
    %9 = tpu.matmul %7, %8, %cst_6 {dimension_numbers = #tpu.dot_dimension_numbers<[1], [0], [0], [1], [0, 0, 1, 1], [], []>} : vector<8x128xf32>, vector<128x256xf32>, vector<8x256xf32> -> vector<8x256xf32>
    %10 = vector.extract_strided_slice %9 {offsets = [0, 0], sizes = [8, 128], strides = [1, 1]} : vector<8x256xf32> to vector<8x128xf32>
    %11 = vector.extract_strided_slice %9 {offsets = [0, 128], sizes = [8, 128], strides = [1, 1]} : vector<8x256xf32> to vector<8x128xf32>
    %12 = arith.mulf %10, %10 : vector<8x128xf32>
    %13 = arith.mulf %11, %11 : vector<8x128xf32>
    %14 = arith.addf %12, %13 : vector<8x128xf32>
    %c0_7 = arith.constant 0 : index
    %c0_8 = arith.constant 0 : index
    %15 = vector.load %arg5[%c0_7, %c0_8] : memref<128x16xf32, #tpu.memory_space<vmem>>, vector<128x16xf32>
    %cst_9 = arith.constant dense<0.000000e+00> : vector<8x16xf32>
    %16 = tpu.matmul %14, %15, %cst_9 {dimension_numbers = #tpu.dot_dimension_numbers<[1], [0], [0], [1], [0, 0, 1, 1], [], []>} : vector<8x128xf32>, vector<128x16xf32>, vector<8x16xf32> -> vector<8x16xf32>
    %17 = vector.extract_strided_slice %16 {offsets = [0, 0], sizes = [8, 8], strides = [1, 1]} : vector<8x16xf32> to vector<8x8xf32>
    %18 = vector.extract_strided_slice %16 {offsets = [0, 8], sizes = [8, 8], strides = [1, 1]} : vector<8x16xf32> to vector<8x8xf32>
    %19 = arith.maximumf %17, %18 : vector<8x8xf32>
    %20 = arith.subf %17, %19 : vector<8x8xf32>
    %21 = math.exp %20 : vector<8x8xf32>
    %22 = arith.subf %18, %19 : vector<8x8xf32>
    %23 = math.exp %22 : vector<8x8xf32>
    %24 = arith.addf %21, %23 : vector<8x8xf32>
    %25 = math.log %24 : vector<8x8xf32>
    %26 = arith.addf %19, %25 : vector<8x8xf32>
    %c0_10 = arith.constant 0 : index
    %c0_11 = arith.constant 0 : index
    %27 = vector.load %arg2[%c0_10, %c0_11] : memref<8x8xf32, #tpu.memory_space<vmem>>, vector<8x8xf32>
    %cst_12 = arith.constant 1.000000e+00 : f32
    %28 = vector.broadcast %cst_12 : f32 to vector<8x8xf32>
    %29 = arith.subf %28, %27 : vector<8x8xf32>
    %30 = arith.mulf %17, %29 : vector<8x8xf32>
    %31 = arith.mulf %18, %27 : vector<8x8xf32>
    %32 = arith.addf %30, %31 : vector<8x8xf32>
    %33 = arith.subf %26, %32 : vector<8x8xf32>
    %34 = tpu.iota {dimensions = array<i32: 0>} : vector<8x8xi32>
    %35 = tpu.iota {dimensions = array<i32: 1>} : vector<8x8xi32>
    %c8_i32 = arith.constant 8 : i32
    %36 = arith.muli %arg0, %c8_i32 : i32
    %37 = vector.broadcast %36 : i32 to vector<8x8xi32>
    %38 = arith.addi %37, %34 : vector<8x8xi32>
    %c8_i32_13 = arith.constant 8 : i32
    %39 = vector.broadcast %c8_i32_13 : i32 to vector<8x8xi32>
    %40 = arith.muli %38, %39 : vector<8x8xi32>
    %41 = arith.addi %40, %35 : vector<8x8xi32>
    %c2_i32 = arith.constant 2 : i32
    %42 = vector.broadcast %c2_i32 : i32 to vector<8x8xi32>
    %43 = arith.cmpi slt, %41, %42 : vector<8x8xi32>
    %cst_14 = arith.constant 0.000000e+00 : f32
    %44 = vector.broadcast %cst_14 : f32 to vector<8x8xf32>
    %45 = arith.select %43, %33, %44 : vector<8x8xi1>, vector<8x8xf32>
    %46 = vector.shape_cast %45 : vector<8x8xf32> to vector<1x8x8xf32>
    %cst_15 = arith.constant dense<0.000000e+00> : vector<1xf32>
    %47 = vector.multi_reduction <add>, %46, %cst_15 [1, 2] : vector<1x8x8xf32> to vector<1xf32>
    %48 = vector.shape_cast %47 : vector<1xf32> to vector<1x1x1xf32>
    %49 = vector.extract %48[0, 0, 0] : f32 from vector<1x1x1xf32>
    %50 = vector.broadcast %49 : f32 to vector<1x1xf32>
    %c0_16 = arith.constant 0 : index
    %c0_17 = arith.constant 0 : index
    %51 = vector.load %arg6[%c0_16, %c0_17] : memref<1x1xf32, #tpu.memory_space<vmem>>, vector<1x1xf32>
    tpu.vector_store %arg6[%c0_16, %c0_17], %50 {strides = array<i32>} : memref<1x1xf32, #tpu.memory_space<vmem>>, vector<1x1xf32>,
    return
  }
  func.func @transform_0(%arg0: i32) -> (i32, i32) {
    %c0_i32 = arith.constant 0 : i32
    %c0_i32_0 = arith.constant 0 : i32
    return %arg0, %c0_i32 : i32, i32
  }
  func.func @transform_1(%arg0: i32) -> (i32, i32) {
    %c0_i32 = arith.constant 0 : i32
    %c0_i32_0 = arith.constant 0 : i32
    return %arg0, %c0_i32 : i32, i32
  }
  func.func @transform_2(%arg0: i32) -> (i32, i32) {
    %c0_i32 = arith.constant 0 : i32
    %c0_i32_0 = arith.constant 0 : i32
    %c0_i32_1 = arith.constant 0 : i32
    return %c0_i32, %c0_i32_0 : i32, i32
  }
  func.func @transform_3(%arg0: i32) -> (i32, i32) {
    %c0_i32 = arith.constant 0 : i32
    %c0_i32_0 = arith.constant 0 : i32
    %c0_i32_1 = arith.constant 0 : i32
    return %c0_i32, %c0_i32_0 : i32, i32
  }
  func.func @transform_4(%arg0: i32) -> (i32, i32) {
    %c0_i32 = arith.constant 0 : i32
    %c0_i32_0 = arith.constant 0 : i32
    %c0_i32_1 = arith.constant 0 : i32
    return %c0_i32, %c0_i32_0 : i32, i32
  }
  func.func @transform_5(%arg0: i32) -> (i32, i32) {
    %c0_i32 = arith.constant 0 : i32
    %c0_i32_0 = arith.constant 0 : i32
    return %arg0, %c0_i32 : i32, i32
  }
}

</mosaic_0001>

<bundles_post_ra>
// kernel: qcl_classifier_loss.1
= control target key start
LH: loop header
LB: loop body
LE: loop exit
PB: predicated region body
PF: predicated region fallthrough
CT: control target
= control target key end

     0   :  { %10 = vsyncpa [#allocation3], 0  ;;  %s886_s0 = inlined_call_operand.vmem [shape: f32[8,128], index: 0, kind: input, shape index: {}]   ;;  %s887_s1 = inlined_call_operand.vmem [shape: f32[8,8], index: 1, kind: input, shape index: {}]   ;;  %s888_s2 = inlined_call_operand.hbm [shape: f32[128,128], index: 2, kind: input, shape index: {}]   ;;  %s889_s3 = inlined_call_operand.vmem [shape: f32[128,256], index: 3, kind: input, shape index: {}]   ;;  %s890_s4 = inlined_call_operand.vmem [shape: f32[128,16], index: 4, kind: input, shape index: {}]   ;;  %s891_s5 = inlined_call_operand.hbm [shape: f32[1,1], index: 5, kind: output, shape index: {}]  }
   0x1   :  { %11 = vsyncpa [#allocation4], 0  ;;  %s645_s18 = smov [#allocation2]   ;;  %s597_s22 = scalar_lea.hbm %s888_s2, 2048 }
   0x2   :  { %s21_s19 = sshll.u32 %s645_s18, 4  ;;  %p598_p0 = scmp.ne.s32.totalorder %s888_s2, %s597_s22  ;;  %s22_s19 = int_to_ptr.vmem [resolvable:$true] %s21_s19 }
   0x3   :  { %p601_p1 = scmp.lt.u32.totalorder %s597_s22, %s888_s2 }
   0x5   :  { %p603_p2 = pnand %p601_p1, %p598_p0 }
   0x7   :  { %606 = shalt.err (!%p603_p2)
}
   0x8   :  { %s607_s27 = scalar_lea.vmem %s22_s19, 2048  ;;  %p612_p4 = scmp.lt.s32.totalorder %s22_s19, %s22_s19 }
   0x9   :  { %p608_p3 = scmp.ne.s32.totalorder %s22_s19, %s607_s27  ;;  %p613_p5 = scmp.lt.s32.totalorder %s607_s27, %s607_s27 }
   0xb   :  { %p614_p6 = por %p613_p5, %p612_p4 }
   0xd   :  { %p615_p7 = pnand %p614_p6, %p608_p3 }
   0xf   :  { %618 = shalt.err (!%p615_p7)
}
  0x10   :  { %s646_s28 = smov 128   ;;  %s647_s29 = smov 8  }
  0x11   :  { %27 = dma.hbm_to_vmem [thread:$0]  %s888_s2, 2048, %s22_s19, [#allocation3], %s646_s28, %s646_s28, %s647_s29  }
  0x12   :  { %641 = dma.done.wait [#allocation3], 2048  }
  0x13   :  { %642 = vsyncadd [#allocation3], 4294965248  ;;  %v648_v0 = vmov 0.0|0.0   ;;  %vm649_vm0 = vmmov 0   ;;  %v650_v1 = vmov 0.0   ;;  %v37_v2 = vld [vmem:[#allocation2] sm:$0xff] }
  0x14   :  { %499 = vmatprep.subr.bf16.mxu0 %v648_v0  ;;  %461 = vmatprep.mubr.msk.f32.mxu0 %vm649_vm0, %v650_v1  ;;  %v38_v3 = vld [vmem:[#allocation2 + $0x8] sm:$0xff]  ;;  %v39_v4 = vld [vmem:[#allocation2 + $0x10] sm:$0xff]  ;;  %v40_v6 = vld [vmem:[#allocation2 + $0x18] sm:$0xff]  ;;  %s651_s27 = smov 120   ;;  %vm366_vm2 = vcmask 64512   ;;  %vm378_vm3 = vcmask 0  }
  0x15   :  { %222 = vmatprep.mubr.f32.mxu1 %v650_v1  ;;  %v500_v5 = vpack.c.bf16 %v38_v3, %v37_v2  ;;  %v503_v7 = vpack.c.bf16 %v40_v6, %v39_v4  ;;  %v41_v8 = vld [vmem:[#allocation2 + $0x20] sm:$0xff]  ;;  %v42_v9 = vld [vmem:[#allocation2 + $0x28] sm:$0xff]  ;;  %v43_v11 = vld [vmem:[#allocation2 + $0x30] sm:$0xff] }
  0x16   :  { %v127_v10 = vld [vmem:[%s889_s3 + $0x8] sm:$0xff]  ;;  %v44_v12 = vld [vmem:[#allocation2 + $0x38] sm:$0xff]  ;;  %v126_v14 = vld [vmem:[%s889_s3] sm:$0xff]  ;;  %v506_v16 = vpack.c.bf16 %v42_v9, %v41_v8 }
  0x17   :  { %501 = vmatpush3.bf16.msra.mxu0 %v500_v5  ;;  %v129_v13 = vld [vmem:[%s889_s3 + $0x18] sm:$0xff]  ;;  %v128_v15 = vld [vmem:[%s889_s3 + $0x10] sm:$0xff]  ;;  %v131_v19 = vld [vmem:[%s889_s3 + $0x28] sm:$0xff]  ;;  %v509_v27 = vpack.c.bf16 %v44_v12, %v43_v11 }
  0x18   :  { %502 = vmatprep.subr.bf16.mxu0 %v648_v0  ;;  %v523_v17 = vpack.c.bf16 %v129_v13, %v127_v10  ;;  %v525_v18 = vpack.c.bf16 %v128_v15, %v126_v14  ;;  %v133_v20 = vld [vmem:[%s889_s3 + $0x38] sm:$0xff]  ;;  %v130_v21 = vld [vmem:[%s889_s3 + $0x20] sm:$0xff]  ;;  %v132_v23 = vld [vmem:[%s889_s3 + $0x30] sm:$0xff] }
  0x19   :  { %v527_v22 = vpack.c.bf16 %v133_v20, %v131_v19  ;;  %v135_v24 = vld [vmem:[%s889_s3 + $0x48] sm:$0xff]  ;;  %v137_v25 = vld [vmem:[%s889_s3 + $0x58] sm:$0xff]  ;;  %v529_v26 = vpack.c.bf16 %v132_v23, %v130_v21  ;;  %v45_v28 = vld [vmem:[#allocation2 + $0x40] sm:$0xff] }
  0x1a   :  { %524 = vmatprep.subr.bf16.mxu1 %v523_v17  ;;  %v531_v29 = vpack.c.bf16 %v137_v25, %v135_v24  ;;  %v134_v30 = vld [vmem:[%s889_s3 + $0x40] sm:$0xff]  ;;  %v136_v31 = vld [vmem:[%s889_s3 + $0x50] sm:$0xff]  ;;  %v46_v32 = vld [vmem:[#allocation2 + $0x48] sm:$0xff] }
  0x1b   :  { %504 = vmatpush3.bf16.msra.mxu0 %v503_v7  ;;  %526 = vmatpush1.bf16.msra.mxu1 %v525_v18  ;;  %v139_v33 = vld [vmem:[%s889_s3 + $0x68] sm:$0xff]  ;;  %v141_v34 = vld [vmem:[%s889_s3 + $0x78] sm:$0xff]  ;;  %v533_v35 = vpack.c.bf16 %v136_v31, %v134_v30  ;;  %v512_v36 = vpack.c.bf16 %v46_v32, %v45_v28  ;;  %v138_v38 = vld [vmem:[%s889_s3 + $0x60] sm:$0xff] }
  0x1c   :  { %505 = vmatprep.subr.bf16.mxu0 %v648_v0  ;;  %528 = vmatprep.subr.bf16.mxu1 %v527_v22  ;;  %v535_v37 = vpack.c.bf16 %v141_v34, %v139_v33  ;;  %v140_v39 = vld [vmem:[%s889_s3 + $0x70] sm:$0xff]  ;;  %v48_v41 = vld [vmem:[#allocation2 + $0x58] sm:$0xff]  ;;  %v49_v44 = vld [vmem:[#allocation2 + $0x60] sm:$0xff] }
  0x1d   :  { %v47_v40 = vld [vmem:[#allocation2 + $0x50] sm:$0xff]  ;;  %v537_v42 = vpack.c.bf16 %v140_v39, %v138_v38  ;;  %v50_v45 = vld [vmem:[#allocation2 + $0x68] sm:$0xff]  ;;  %v52_v48 = vld [vmem:[#allocation2 + $0x78] sm:$0xff] }
  0x1e   :  { %v515_v43 = vpack.c.bf16 %v48_v41, %v47_v40  ;;  %v518_v46 = vpack.c.bf16 %v50_v45, %v49_v44  ;;  %v51_v47 = vld [vmem:[#allocation2 + $0x70] sm:$0xff]  ;;  %v757_v50 = vld [vmem:[%s886_s0] sm:$0xff]  ;;  %v143_v52 = vld [vmem:[%s889_s3 + $0x88] sm:$0xff] }
  0x1f   :  { %507 = vmatpush3.bf16.msra.mxu0 %v506_v16  ;;  %530 = vmatpush1.bf16.msra.mxu1 %v529_v26  ;;  %v521_v49 = vpack.c.bf16 %v52_v48, %v51_v47  ;;  %v36_v51 = vmul.f32 %v757_v50, %v757_v50  ;;  %v145_v53 = vld [vmem:[%s889_s3 + $0x98] sm:$0xff]  ;;  %v142_v55 = vld [vmem:[%s889_s3 + $0x80] sm:$0xff]  ;;  %v144_v56 = vld [vmem:[%s889_s3 + $0x90] sm:$0xff] }
  0x20   :  { %508 = vmatprep.subr.bf16.mxu0 %v648_v0  ;;  %532 = vmatprep.subr.bf16.mxu1 %v531_v29  ;;  %v539_v54 = vpack.c.bf16 %v145_v53, %v143_v52  ;;  %v541_v57 = vpack.c.bf16 %v144_v56, %v142_v55  ;;  %v147_v58 = vld [vmem:[%s889_s3 + $0xa8] sm:$0xff]  ;;  %v149_v59 = vld [vmem:[%s889_s3 + $0xb8] sm:$0xff]  ;;  %v146_v61 = vld [vmem:[%s889_s3 + $0xa0] sm:$0xff] }
  0x21   :  { %v543_v60 = vpack.c.bf16 %v149_v59, %v147_v58  ;;  %v148_v62 = vld [vmem:[%s889_s3 + $0xb0] sm:$0xff]  ;;  %v153_v2 = vld [vmem:[%s889_s3 + $0xd8] sm:$0xff]  ;;  %v150_v3 = vld [vmem:[%s889_s3 + $0xc0] sm:$0xff] }
  0x22   :  { %v545_v63 = vpack.c.bf16 %v148_v62, %v146_v61  ;;  %v152_v5 = vld [vmem:[%s889_s3 + $0xd0] sm:$0xff]  ;;  %v155_v6 = vld [vmem:[%s889_s3 + $0xe8] sm:$0xff]  ;;  %v157_v7 = vld [vmem:[%s889_s3 + $0xf8] sm:$0xff] }
  0x23   :  { %510 = vmatpush3.bf16.msra.mxu0 %v509_v27  ;;  %534 = vmatpush1.bf16.msra.mxu1 %v533_v35  ;;  %v549_v8 = vpack.c.bf16 %v152_v5, %v150_v3  ;;  %v551_v9 = vpack.c.bf16 %v157_v7, %v155_v6  ;;  %v154_v10 = vld [vmem:[%s889_s3 + $0xe0] sm:$0xff]  ;;  %v156_v11 = vld [vmem:[%s889_s3 + $0xf0] sm:$0xff]  ;;  %v233_v14 = vld [vmem:[%s890_s4 + $0x8] sm:$0xff] }
  0x24   :  { %511 = vmatprep.subr.bf16.mxu0 %v648_v0  ;;  %536 = vmatprep.subr.bf16.mxu1 %v535_v37  ;;  %v553_v12 = vpack.c.bf16 %v156_v11, %v154_v10  ;;  %v232_v13 = vld [vmem:[%s890_s4] sm:$0xff]  ;;  %v234_v15 = vld [vmem:[%s890_s4 + $0x10] sm:$0xff]  ;;  %v235_v17 = vld [vmem:[%s890_s4 + $0x18] sm:$0xff] }
  0x25   :  { %v556_v16 = vpack.c.bf16 %v233_v14, %v232_v13  ;;  %v559_v18 = vpack.c.bf16 %v235_v17, %v234_v15  ;;  %v236_v19 = vld [vmem:[%s890_s4 + $0x20] sm:$0xff]  ;;  %v237_v20 = vld [vmem:[%s890_s4 + $0x28] sm:$0xff]  ;;  %v238_v22 = vld [vmem:[%s890_s4 + $0x30] sm:$0xff] }
  0x26   :  { %v562_v21 = vpack.c.bf16 %v237_v20, %v236_v19  ;;  %v239_v23 = vld [vmem:[%s890_s4 + $0x38] sm:$0xff]  ;;  %v240_v25 = vld [vmem:[%s890_s4 + $0x40] sm:$0xff]  ;;  %v241_v26 = vld [vmem:[%s890_s4 + $0x48] sm:$0xff] }
  0x27   :  { %513 = vmatpush3.bf16.msra.mxu0 %v512_v36  ;;  %538 = vmatpush1.bf16.msra.mxu1 %v537_v42  ;;  %v565_v24 = vpack.c.bf16 %v239_v23, %v238_v22  ;;  %v568_v27 = vpack.c.bf16 %v241_v26, %v240_v25  ;;  %v242_v28 = vld [vmem:[%s890_s4 + $0x50] sm:$0xff]  ;;  %v243_v29 = vld [vmem:[%s890_s4 + $0x58] sm:$0xff]  ;;  %v244_v31 = vld [vmem:[%s890_s4 + $0x60] sm:$0xff] }
  0x28   :  { %514 = vmatprep.subr.bf16.mxu0 %v648_v0  ;;  %540 = vmatprep.subr.bf16.mxu1 %v539_v54  ;;  %v571_v30 = vpack.c.bf16 %v243_v29, %v242_v28  ;;  %v245_v32 = vld [vmem:[%s890_s4 + $0x68] sm:$0xff]  ;;  %v246_v39 = vld [vmem:[%s890_s4 + $0x70] sm:$0xff]  ;;  %v247_v40 = vld [vmem:[%s890_s4 + $0x78] sm:$0xff] }
  0x29   :  { %v574_v33 = vpack.c.bf16 %v245_v32, %v244_v31  ;;  %v577_v41 = vpack.c.bf16 %v247_v40, %v246_v39 }
  0x2b   :  { %516 = vmatpush3.bf16.msra.mxu0 %v515_v43  ;;  %542 = vmatpush1.bf16.msra.mxu1 %v541_v57 }
  0x2c   :  { %517 = vmatprep.subr.bf16.mxu0 %v648_v0  ;;  %544 = vmatprep.subr.bf16.mxu1 %v543_v60 }
  0x2f   :  { %519 = vmatpush3.bf16.msra.mxu0 %v518_v46  ;;  %546 = vmatpush1.bf16.msra.mxu1 %v545_v63 }
  0x30   :  { %520 = vmatprep.subr.bf16.mxu0 %v648_v0 }
  0x33   :  { %522 = vmatpush3.bf16.msra.mxu0 %v521_v49 }
  0x34   :  { %555 = vmatprep.subr.bf16.mxu0 %v648_v0 }
  0x36   :  { %462 = vmatmul.mubr.f32.vlgmr.msra.gmra.mrb[0].mxu0 %v36_v51 }
  0x37   :  { %496 = vmatprep.mubr.msk.f32.mxu0 %vm649_vm0, %v650_v1  ;;  %v151_v1 = vld [vmem:[%s889_s3 + $0xc8] sm:$0xff]  ;;  %557 = vmatpush3.bf16.msra.mxu0 %v556_v16 }
  0x38   :  { %v547_v4 = vpack.c.bf16 %v153_v2, %v151_v1  ;;  %558 = vmatprep.subr.bf16.mxu0 %v648_v0  ;;  %v355_v1 = vlaneseq }
  0x3a   :  { %548 = vmatprep.subr.bf16.mxu1 %v547_v4  ;;  %v356_v2 = vshrl.u32 %v355_v1, 7  ;;  %v358_v3 = vand.u32 127, %v355_v1 }
  0x3b   :  { %550 = vmatpush1.bf16.msra.mxu1 %v549_v8  ;;  %560 = vmatpush3.bf16.msra.mxu0 %v559_v18 }
  0x3c   :  { %552 = vmatprep.subr.bf16.mxu1 %v551_v9  ;;  %561 = vmatprep.subr.bf16.mxu0 %v648_v0  ;;  %v362_v4 = vmul.u32 8, %v356_v2 }
  0x3e   :  { %v363_v7 = vadd.s32 %v362_v4, %v358_v3 }
  0x3f   :  { %554 = vmatpush1.bf16.msra.mxu1 %v553_v12  ;;  %563 = vmatpush3.bf16.msra.mxu0 %v562_v21 }
  0x40   :  { %564 = vmatprep.subr.bf16.mxu0 %v648_v0  ;;  %vm364_vm1 = vcmp.lt.s32.totalorder %v363_v7, 2 }
  0x43   :  { %566 = vmatpush3.bf16.msra.mxu0 %v565_v24 }
  0x44   :  { %567 = vmatprep.subr.bf16.mxu0 %v648_v0 }
  0x47   :  { %569 = vmatpush3.bf16.msra.mxu0 %v568_v27 }
  0x48   :  { %570 = vmatprep.subr.bf16.mxu0 %v648_v0 }
  0x4b   :  { %572 = vmatpush3.bf16.msra.mxu0 %v571_v30 }
  0x4c   :  { %573 = vmatprep.subr.bf16.mxu0 %v648_v0 }
  0x4f   :  { %575 = vmatpush3.bf16.msra.mxu0 %v574_v33 }
  0x50   :  { %576 = vmatprep.subr.bf16.mxu0 %v648_v0  ;;  %v341_v0 = vld [vmem:[%s887_s1] sm:$0xff]  ;;  %s652_s1 = smov [#allocation5]  }
  0x51   :  { %345 = vrot.lane.b32.xlu1 %v341_v0, %s647_s29  ;;  %v342_v47 = vsub.f32 1.0, %v341_v0  ;;  %s386_s4 = sshll.u32 %s652_s1, 4  ;;  %s387_s4 = int_to_ptr.vmem [resolvable:$true] %s386_s4 }
  0x52   :  { %s619_s3 = scalar_lea.vmem %s387_s4, 16  ;;  %s623_s28 = scalar_lea.vmem %s387_s4, 32 }
  0x53   :  { %578 = vmatpush3.bf16.msra.mxu0 %v577_v41  ;;  %p620_p8 = scmp.ne.s32.totalorder %s387_s4, %s619_s3  ;;  %p624_p9 = scmp.lt.s32.totalorder %s387_s4, %s387_s4 }
  0x54   :  { %p625_p10 = scmp.lt.s32.totalorder %s623_s28, %s619_s3 }
  0x56   :  { %p626_p11 = por %p625_p10, %p624_p9 }
  0x58   :  { %p627_p12 = pnand %p626_p11, %p620_p8 }
  0xc3   :  { %v346_v53 = vpop.permute.xlu1 %345 }
 0x109   :  { %v119_v34 = vpop.f32.mrb[0].mxu0 }
 0x10a   :  { %v123_v35 = vmax.f32 %v119_v34, 1e-12  ;;  %v463_v36 = vpop.f32.mrb[1].mxu0 }
 0x10c   :  { %589 = vrsqrt.f32 %v123_v35 }
 0x116   :  { %v590_v37 = vpop.eup %589 }
 0x117   :  { %v125_v38 = vmul.f32 %v590_v37, %v757_v50 }
 0x119   :  { %223 = vmatmul.mubr.f32.vlgmr.msra.gmra.mrb[0].mxu1 %v125_v38 }
 0x1ec   :  { %v224_v42 = vpop.f32.mrb[0].mxu1 }
 0x1ed   :  { %v229_v43 = vmul.f32 %v224_v42, %v224_v42  ;;  %v226_v44 = vpop.f32.mrb[1].mxu1 }
 0x1ee   :  { %v230_v45 = vmul.f32 %v226_v44, %v226_v44 }
 0x1f0   :  { %v231_v46 = vadd.f32 %v230_v45, %v229_v43 }
 0x1f2   :  { %497 = vmatmul.mubr.f32.vlgmr.msra.gmra.mrb[2].mxu0 %v231_v46 }
 0x2c5   :  { %v314_v48 = vpop.f32.mrb[2].mxu0 }
 0x2c6   :  { %319 = vrot.lane.b32.xlu0 %v314_v48, %s651_s27  ;;  %v498_v49 = vpop.f32.mrb[3].mxu0  ;;  %v343_v50 = vmul.f32 %v342_v47, %v314_v48  ;;  %v348_v54 = vmul.f32 %v346_v53, %v314_v48 }
 0x338   :  { %v320_v51 = vpop.permute.xlu0 %319 }
 0x339   :  { %v322_v52 = vmax.f32 %v314_v48, %v320_v51 }
 0x33b   :  { %327 = vrot.lane.b32.xlu0 %v322_v52, %s647_s29  ;;  %v323_v59 = vsub.f32 %v314_v48, %v322_v52 }
 0x33d   :  { %v324_v60 = vmul.f32 1.442695, %v323_v59 }
 0x33f   :  { %350 = vrot.lane.b32.xlu0 %v348_v54, %s651_s27 }
 0x3ad   :  { %v328_v55 = vpop.permute.xlu0 %327 }
 0x3ae   :  { %v330_v56 = vsub.f32 %v314_v48, %v328_v55 }
 0x3b0   :  { %v331_v57 = vmul.f32 1.442695, %v330_v56 }
 0x3b1   :  { %v351_v6 = vpop.permute.xlu0 %350 }
 0x3b2   :  { %591 = vpow2.f32 %v331_v57  ;;  %v353_v9 = vadd.f32 %v351_v6, %v343_v50 }
 0x3b3   :  { %593 = vpow2.f32 %v324_v60 }
 0x3bc   :  { %v592_v58 = vpop.eup %591 }
 0x3bd   :  { %334 = vrot.lane.b32.xlu1 %v592_v58, %s651_s27  ;;  %v594_v61 = vpop.eup %593 }
 0x42f   :  { %v335_v62 = vpop.permute.xlu1 %334 }
 0x430   :  { %v337_v63 = vadd.f32 %v594_v61, %v335_v62 }
 0x432   :  { %595 = vlog2.f32 %v337_v63 }
 0x43c   :  { %v596_v5 = vpop.eup %595 }
 0x43d   :  { %v339_v8 = vmul.f32 0.6931472, %v596_v5 }
 0x43f   :  { %v340_v10 = vadd.f32 %v339_v8, %v322_v52 }
 0x441   :  { %v354_v11 = vsub.f32 %v340_v10, %v353_v9 }
 0x443   :  { %v365_v12 = vsel %vm364_vm1, %v354_v11, 0.0 }
 0x444   :  { %v367_v13 = vsel %vm366_vm2, %v365_v12, 0.0 }
 0x445   :  { %368 = vadd.xlane.f32.xlu1 %v367_v13 }
 0x4d2   :  { %v369_v14 = vpop.xlane.xlu1 %368 }
 0x4d3   :  { %v370_v15 = vrot.slane %v369_v14, 4 }
 0x4d5   :  { %v371_v16 = vadd.f32 %v370_v15, %v369_v14 }
 0x4d7   :  { %v372_v17 = vrot.slane %v371_v16, 2 }
 0x4d9   :  { %v373_v18 = vadd.f32 %v372_v17, %v371_v16 }
 0x4db   :  { %v374_v19 = vrot.slane %v373_v18, 1 }
 0x4dd   :  { %v375_v20 = vadd.f32 %v374_v19, %v373_v18 }
 0x4df   :  { %579 = vpush %v375_v20 }
 0x510   :  { %s580_s29 = spop %579 }
 0x511   :  { %v377_v21 = vstv %s580_s29 }
 0x512   :  { %379 = vst.msk [vmem:[#allocation5] sm:$0x1] %vm378_vm3, %v377_v21 }
 0x513   :  { %630 = shalt.err (!%p627_p12)
}
 0x514   :  { %s631_s2 = scalar_lea.hbm %s891_s5, 16 }
 0x515   :  { %p632_p13 = scmp.ne.s32.totalorder %s891_s5, %s631_s2  ;;  %p635_p0 = scmp.lt.u32.totalorder %s631_s2, %s891_s5 }
 0x517   :  { %p637_p1 = pnand %p635_p0, %p632_p13 }
 0x519   :  { %640 = shalt.err (!%p637_p1)
}
 0x51a   :  { %389 = dma.vmem_to_hbm [thread:$0]  %s387_s4, 16, %s891_s5, [#allocation4]  }
 0x51b   :  { %643 = dma.done.wait [#allocation4], 16  }
 0x51c   :  { %644 = vsyncadd [#allocation4], 4294967280 }
 0x51d   :  { %393 = vsyncpa [#allocation3], 1 }
 0x51e   :  { %394 = vsyncpa [#allocation4], 1 }

</bundles_post_ra>
